<compile_context>
chip_gen: v7x
topology: tpu7x:2x2x1
jax: 0.10.0
libtpu: 0.0.40
codegen_flags: <defaults>
</compile_context>

<pallas_src>
import functools

import jax
import jax.numpy as jnp
from jax.experimental import pallas as pl
from jax.experimental.pallas import tpu as pltpu


def _round_up(a: int, b: int) -> int:
    return (a + b - 1) // b * b


def _rmsnorm_kernel(x_ref, g_ref, mr_ref, mb_ref, o_ref, *, eps: float, exact_f32: bool):
    """x_ref: (bn, HD) row slab; g_ref: (1, HD) f32 = gamma*sqrt(D);
    mr_ref: (HD, Hp) bf16 lane->head one-hot (reduce); mb_ref: (Hp, HD) = mr.T."""
    x = x_ref[...].astype(jnp.float32)        # lane-dense slab
    g = g_ref[...]                            # gamma * sqrt(D), f32
    mr = mr_ref[...]                          # bf16 one-hot, reduce direction
    mb = mb_ref[...]                          # bf16 one-hot, broadcast direction

    # Per-head sum of squares on the MXU: ss[n, h] = sum_{lane k in head h} x[n,k]^2.
    # Feed bf16 hi part + residual(s) so the bf16 MXU passes stay f32-accurate.
    xx = x * x
    hi = xx.astype(jnp.bfloat16)
    xx = xx - hi.astype(jnp.float32)          # overwrite with residual (fewer live slabs)
    ss = jnp.dot(hi, mr, preferred_element_type=jnp.float32)
    lo = xx.astype(jnp.bfloat16)
    ss = ss + jnp.dot(lo, mr, preferred_element_type=jnp.float32)
    if exact_f32:
        # Third residual term for f32 inputs: reduce error ~2^-24 instead of ~2^-16.
        lo2 = (xx - lo.astype(jnp.float32)).astype(jnp.bfloat16)
        ss = ss + jnp.dot(lo2, mr, preferred_element_type=jnp.float32)

    # F.normalize(x, eps=1e-12): x / max(||x||, eps) == x * rsqrt(max(ss, eps^2)).
    inv = jax.lax.rsqrt(jnp.maximum(ss, eps * eps))           # (bn, Hp), EUP slot

    # Broadcast inv back across each head's D lanes with the transposed one-hot
    # mask.  3-term bf16 split is exact: every output lane is a plain copy of a
    # single inv[n, h], so b1+b2+b3 reconstructs the f32 value bit-accurately.
    b1 = inv.astype(jnp.bfloat16)
    r = inv - b1.astype(jnp.float32)
    b2 = r.astype(jnp.bfloat16)
    b3 = (r - b2.astype(jnp.float32)).astype(jnp.bfloat16)
    invb = jnp.dot(b1, mb, preferred_element_type=jnp.float32)
    invb = invb + jnp.dot(b2, mb, preferred_element_type=jnp.float32)
    invb = invb + jnp.dot(b3, mb, preferred_element_type=jnp.float32)   # (bn, HD)

    o_ref[...] = (x * invb * g).astype(o_ref.dtype)


def sparse_multihead_rmsnorm(x: jax.Array, gamma: jax.Array, *, block_rows: int | None = None) -> jax.Array:
    """x: (N, heads, dim) sparse-point features; gamma: (heads, dim)."""
    N, H, D = x.shape
    assert gamma.shape == (H, D), (gamma.shape, (H, D))
    HD = H * D
    Hp = max(16, _round_up(H, 16))            # padded head dim (bf16 sublane friendly)
    eps = 1e-12

    # Lane-dense views; gamma pre-scaled & cast once, outside the hot loop.
    x2 = x.reshape(N, HD)
    g2 = (gamma.astype(jnp.float32) * (float(D) ** 0.5)).reshape(1, HD)
    lane_head = jnp.arange(HD, dtype=jnp.int32) // D
    heads_idx = jnp.arange(Hp, dtype=jnp.int32)
    mr = (lane_head[:, None] == heads_idx[None, :]).astype(jnp.bfloat16)   # (HD, Hp)
    mb = (heads_idx[:, None] == lane_head[None, :]).astype(jnp.bfloat16)   # (Hp, HD)
    # (Padded head columns/rows are all-zero: they produce harmless zeros that
    #  never feed back into real lanes.)

    # --- Row-tile sizing: explicit VMEM budget, sized for v7x (64 MiB) -------
    in_item = x.dtype.itemsize
    vmem_budget = 40 * 1024 * 1024
    # double-buffered input + double-buffered output (input dtype) + ~4 live
    # f32 (bn, HD) temporaries inside the body.
    per_row = HD * (2 * in_item + 2 * in_item + 4 * 4)
    resident = 2 * (mr.size + mb.size) * 2 + 2 * HD * 4   # masks + gamma, dbl-buffered
    rows_budget = max(8, int((vmem_budget - resident) // per_row) // 8 * 8)

    if block_rows is not None:
        bn = max(8, min(int(block_rows) // 8 * 8, _round_up(N, 8)))
    else:
        # Keep at least 2 row blocks so the "parallel" axis can shard across
        # both TensorCores on v7x; cdiv grid handles any ragged tail.
        bn = min(rows_budget, max(8, _round_up(pl.cdiv(N, 2), 8)))
    grid = (pl.cdiv(N, bn),)

    out = pl.pallas_call(
        functools.partial(_rmsnorm_kernel, eps=eps,
                          exact_f32=(x.dtype == jnp.float32)),
        out_shape=jax.ShapeDtypeStruct((N, HD), x.dtype),
        grid_spec=pltpu.PrefetchScalarGridSpec(
            num_scalar_prefetch=0,
            grid=grid,
            in_specs=[
                pl.BlockSpec((bn, HD), lambda i: (i, 0)),   # streamed row slab
                pl.BlockSpec((1, HD), lambda i: (0, 0)),    # resident gamma*sqrt(D)
                pl.BlockSpec((HD, Hp), lambda i: (0, 0)),   # resident reduce one-hot
                pl.BlockSpec((Hp, HD), lambda i: (0, 0)),   # resident broadcast one-hot
            ],
            out_specs=pl.BlockSpec((bn, HD), lambda i: (i, 0)),
        ),
        compiler_params=pltpu.CompilerParams(
            dimension_semantics=("parallel",),
            vmem_limit_bytes=48 * 1024 * 1024,
        ),
    )(x2, g2, mr, mb)

    return out.reshape(N, H, D)


def _reference(x: jax.Array, gamma: jax.Array) -> jax.Array:
    # Pure-JAX mirror of the PyTorch forward (F.normalize + gamma * sqrt(dim)).
    x_type = x.dtype
    xf = x.astype(jnp.float32)
    norm = jnp.maximum(jnp.sqrt(jnp.sum(xf * xf, axis=-1, keepdims=True)), 1e-12)
    y = xf / norm
    scale = float(x.shape[-1]) ** 0.5
    return (y * gamma.astype(jnp.float32)[None, :, :] * scale).astype(x_type)


def _check(x, gamma, atol=1e-5, rtol=1e-5, **kw):
    out = jax.block_until_ready(sparse_multihead_rmsnorm(x, gamma, **kw))
    ref = _reference(x, gamma)
    assert out.shape == x.shape and out.dtype == x.dtype
    ok = jnp.allclose(out.astype(jnp.float32), ref.astype(jnp.float32), atol=atol, rtol=rtol)
    assert bool(ok), "mismatch vs reference"


if __name__ == "__main__":
    key = jax.random.PRNGKey(0)
    k1, k2, k3, k4, kg = jax.random.split(key, 5)

    heads, dim = 4, 32  # heads*dim = 128 -> one full lane group
    gamma = 1.0 + 0.1 * jax.random.normal(kg, (heads, dim), dtype=jnp.float32)

    # (a) even N, default tiling.
    _check(jax.random.normal(k1, (16, heads, dim), dtype=jnp.float32), gamma)
    # (b) ragged N: partial last block, no pad/slice.
    _check(jax.random.normal(k2, (13, heads, dim), dtype=jnp.float32), gamma)
    # (c) multi-step grid + ragged tail (forces several row blocks).
    _check(jax.random.normal(k3, (21, heads, dim), dtype=jnp.float32), gamma, block_rows=8)
    # (d) bf16 inputs (exercises dtype-aware tile sizing; bf16-rounded outputs).
    xb = jax.random.normal(k4, (19, heads, dim), dtype=jnp.float32).astype(jnp.bfloat16)
    _check(xb, gamma, atol=1e-2, rtol=1e-2)

    # TODO(synk): SparseTensor coordinate bookkeeping (x.replace(...)) is host-side
    # metadata and is intentionally not modeled here.
    print("KERNEL_OK")
</pallas_src>

<mosaic_0001>
module attributes {stable_mosaic.version = 11 : i64} {
  func.func @_rmsnorm_kernel(%arg0: i32, %arg1: memref<8x128xf32, #tpu.memory_space<vmem>>, %arg2: memref<1x128xf32, #tpu.memory_space<vmem>>, %arg3: memref<128x16xbf16, #tpu.memory_space<vmem>>, %arg4: memref<16x128xbf16, #tpu.memory_space<vmem>>, %arg5: memref<8x128xf32, #tpu.memory_space<vmem>>) attributes {dimension_semantics = [#tpu.dimension_semantics<parallel>], iteration_bounds = array<i64: 2>, scalar_prefetch = 0 : i64, scratch_operands = 0 : i64, tpu.core_type = #tpu.core_type<tc>, window_params = [{transform_indices = @transform_0, window_bounds = array<i64: 8, 128>}, {pipeline_mode = #tpu.pipeline_mode<synchronous>, transform_indices = @transform_1, window_bounds = array<i64: 1, 128>}, {pipeline_mode = #tpu.pipeline_mode<synchronous>, transform_indices = @transform_2, window_bounds = array<i64: 128, 16>}, {pipeline_mode = #tpu.pipeline_mode<synchronous>, transform_indices = @transform_3, window_bounds = array<i64: 16, 128>}, {transform_indices = @transform_4, window_bounds = array<i64: 8, 128>}]} {
    %c0 = arith.constant 0 : index
    %c0_0 = arith.constant 0 : index
    %0 = vector.load %arg1[%c0, %c0_0] : memref<8x128xf32, #tpu.memory_space<vmem>>, vector<8x128xf32>
    %c0_1 = arith.constant 0 : index
    %c0_2 = arith.constant 0 : index
    %1 = vector.load %arg2[%c0_1, %c0_2] : memref<1x128xf32, #tpu.memory_space<vmem>>, vector<1x128xf32>
    %c0_3 = arith.constant 0 : index
    %c0_4 = arith.constant 0 : index
    %2 = vector.load %arg3[%c0_3, %c0_4] : memref<128x16xbf16, #tpu.memory_space<vmem>>, vector<128x16xbf16>
    %c0_5 = arith.constant 0 : index
    %c0_6 = arith.constant 0 : index
    %3 = vector.load %arg4[%c0_5, %c0_6] : memref<16x128xbf16, #tpu.memory_space<vmem>>, vector<16x128xbf16>
    %4 = arith.mulf %0, %0 : vector<8x128xf32>
    %5 = arith.truncf %4 : vector<8x128xf32> to vector<8x128xbf16>
    %6 = arith.extf %5 : vector<8x128xbf16> to vector<8x128xf32>
    %7 = arith.subf %4, %6 : vector<8x128xf32>
    %cst = arith.constant dense<0.000000e+00> : vector<8x16xf32>
    %8 = tpu.matmul %5, %2, %cst {dimension_numbers = #tpu.dot_dimension_numbers<[1], [0], [0], [1], [0, 0, 1, 1], [], []>} : vector<8x128xbf16>, vector<128x16xbf16>, vector<8x16xf32> -> vector<8x16xf32>
    %9 = arith.truncf %7 : vector<8x128xf32> to vector<8x128xbf16>
    %cst_7 = arith.constant dense<0.000000e+00> : vector<8x16xf32>
    %10 = tpu.matmul %9, %2, %cst_7 {dimension_numbers = #tpu.dot_dimension_numbers<[1], [0], [0], [1], [0, 0, 1, 1], [], []>} : vector<8x128xbf16>, vector<128x16xbf16>, vector<8x16xf32> -> vector<8x16xf32>
    %11 = arith.addf %8, %10 : vector<8x16xf32>
    %12 = arith.extf %9 : vector<8x128xbf16> to vector<8x128xf32>
    %13 = arith.subf %7, %12 : vector<8x128xf32>
    %14 = arith.truncf %13 : vector<8x128xf32> to vector<8x128xbf16>
    %cst_8 = arith.constant dense<0.000000e+00> : vector<8x16xf32>
    %15 = tpu.matmul %14, %2, %cst_8 {dimension_numbers = #tpu.dot_dimension_numbers<[1], [0], [0], [1], [0, 0, 1, 1], [], []>} : vector<8x128xbf16>, vector<128x16xbf16>, vector<8x16xf32> -> vector<8x16xf32>
    %16 = arith.addf %11, %15 : vector<8x16xf32>
    %cst_9 = arith.constant 1.000000e-24 : f32
    %17 = vector.broadcast %cst_9 : f32 to vector<8x16xf32>
    %18 = arith.maximumf %16, %17 : vector<8x16xf32>
    %19 = math.rsqrt %18 : vector<8x16xf32>
    %20 = arith.truncf %19 : vector<8x16xf32> to vector<8x16xbf16>
    %21 = arith.extf %20 : vector<8x16xbf16> to vector<8x16xf32>
    %22 = arith.subf %19, %21 : vector<8x16xf32>
    %23 = arith.truncf %22 : vector<8x16xf32> to vector<8x16xbf16>
    %24 = arith.extf %23 : vector<8x16xbf16> to vector<8x16xf32>
    %25 = arith.subf %22, %24 : vector<8x16xf32>
    %26 = arith.truncf %25 : vector<8x16xf32> to vector<8x16xbf16>
    %cst_10 = arith.constant dense<0.000000e+00> : vector<8x128xf32>
    %27 = tpu.matmul %20, %3, %cst_10 {dimension_numbers = #tpu.dot_dimension_numbers<[1], [0], [0], [1], [0, 0, 1, 1], [], []>} : vector<8x16xbf16>, vector<16x128xbf16>, vector<8x128xf32> -> vector<8x128xf32>
    %cst_11 = arith.constant dense<0.000000e+00> : vector<8x128xf32>
    %28 = tpu.matmul %23, %3, %cst_11 {dimension_numbers = #tpu.dot_dimension_numbers<[1], [0], [0], [1], [0, 0, 1, 1], [], []>} : vector<8x16xbf16>, vector<16x128xbf16>, vector<8x128xf32> -> vector<8x128xf32>
    %29 = arith.addf %27, %28 : vector<8x128xf32>
    %cst_12 = arith.constant dense<0.000000e+00> : vector<8x128xf32>
    %30 = tpu.matmul %26, %3, %cst_12 {dimension_numbers = #tpu.dot_dimension_numbers<[1], [0], [0], [1], [0, 0, 1, 1], [], []>} : vector<8x16xbf16>, vector<16x128xbf16>, vector<8x128xf32> -> vector<8x128xf32>
    %31 = arith.addf %29, %30 : vector<8x128xf32>
    %32 = arith.mulf %0, %31 : vector<8x128xf32>
    %33 = vector.broadcast %1 : vector<1x128xf32> to vector<8x128xf32>
    %34 = arith.mulf %32, %33 : vector<8x128xf32>
    %c0_13 = arith.constant 0 : index
    %c0_14 = arith.constant 0 : index
    %35 = vector.load %arg5[%c0_13, %c0_14] : memref<8x128xf32, #tpu.memory_space<vmem>>, vector<8x128xf32>
    tpu.vector_store %arg5[%c0_13, %c0_14], %34 {strides = array<i32>} : memref<8x128xf32, #tpu.memory_space<vmem>>, vector<8x128xf32>,
    return
  }
  func.func @transform_0(%arg0: i32) -> (i32, i32) {
    %c0_i32 = arith.constant 0 : i32
    %c0_i32_0 = arith.constant 0 : i32
    return %arg0, %c0_i32 : i32, i32
  }
  func.func @transform_1(%arg0: i32) -> (i32, i32) {
    %c0_i32 = arith.constant 0 : i32
    %c0_i32_0 = arith.constant 0 : i32
    %c0_i32_1 = arith.constant 0 : i32
    return %c0_i32, %c0_i32_0 : i32, i32
  }
  func.func @transform_2(%arg0: i32) -> (i32, i32) {
    %c0_i32 = arith.constant 0 : i32
    %c0_i32_0 = arith.constant 0 : i32
    %c0_i32_1 = arith.constant 0 : i32
    return %c0_i32, %c0_i32_0 : i32, i32
  }
  func.func @transform_3(%arg0: i32) -> (i32, i32) {
    %c0_i32 = arith.constant 0 : i32
    %c0_i32_0 = arith.constant 0 : i32
    %c0_i32_1 = arith.constant 0 : i32
    return %c0_i32, %c0_i32_0 : i32, i32
  }
  func.func @transform_4(%arg0: i32) -> (i32, i32) {
    %c0_i32 = arith.constant 0 : i32
    %c0_i32_0 = arith.constant 0 : i32
    return %arg0, %c0_i32 : i32, i32
  }
}

</mosaic_0001>

<bundles_post_ra>
// kernel: tpu_custom_call.1
= control target key start
LH: loop header
LB: loop body
LE: loop exit
PB: predicated region body
PF: predicated region fallthrough
CT: control target
= control target key end

     0   :  { %9 = vsyncpa [#allocation3], 0  ;;  %s1084_s0 = inlined_call_operand.vmem [shape: f32[16,128], index: 0, kind: input, shape index: {}]   ;;  %s1085_s1 = inlined_call_operand.vmem [shape: f32[1,128], index: 1, kind: input, shape index: {}]   ;;  %s1086_s2 = inlined_call_operand.vmem [shape: bf16[128,16], index: 2, kind: input, shape index: {}]   ;;  %s1087_s3 = inlined_call_operand.vmem [shape: bf16[16,128], index: 3, kind: input, shape index: {}]   ;;  %s1088_s4 = inlined_call_operand.hbm [shape: f32[16,128], index: 4, kind: output, shape index: {}]  }
   0x1   :  { %11 = vsyncpa [#allocation3 + $0x1], 0  ;;  %s910_s15 = smov 0   ;;  %s912_s16 = smov 0  }
   0x2   :  { %s914_s17 = smov 0   ;;  %s916_s18 = smov 0  }
   0x3 LB: > { %s931_s19 = sadd.s32 4294967295, %s880_s18   ;;  %s619_s20 = sadd.s32 4294967294, %s880_s18   ;;  %s880_s18 = sphi %s916_s18, %s1094_s18   ;;  %s876_s17 = sphi %s914_s17, %s1093_s17   ;;  %s872_s16 = sphi %s912_s16, %s1092_s16   ;;  %s868_s15 = sphi %s910_s15, %s1091_s15  }
   0x4   : > { %s935_s21 = sadd.s32 1, %s880_s18   ;;  %s113_s22 = sadd.s32 1, %s876_s17 }
   0x5   : > { %s110_s23 = ssub.s32 %s880_s18, %s935_s21  ;;  %p123_p0 = scmp.ne.s32.totalorder %s876_s17, %s872_s16 }
   0x6   : > { %p111_p1 = scmp.eq.s32.totalorder %s110_s23, 0  ;;  %p124_p2 = scmp.eq.s32.totalorder %s931_s19, 1 }
   0x7   : > { %p129_p3 = scmp.ne.s32.totalorder %s872_s16, %s868_s15  ;;  %p130_p4 = scmp.eq.s32.totalorder %s619_s20, 1 }
   0x8   : > { %s946_s24 = scalar_select %p111_p1, %s876_s17, %s113_s22  }
   0x9   : > { %p948_p5 = por %p124_p2, %p123_p0  ;;  %p952_p6 = por %p130_p4, %p129_p3 }
   0xa   : > { %p622_p7 = scmp.ge.s32.totalorder %s880_s18, 1  ;;  %p164_p8 = scmp.lt.s32.totalorder %s880_s18, 3 }
   0xc   : > { %p165_p9 = pnand %p622_p7, %p164_p8 }
   0xd   : > { %v807_v0 = vld [vmem:[%s1086_s2] sm:$0xff] (!%p165_p9)   ;;  %v882_v1 = vmov (!%p165_p9), 0.0   ;;  %v808_v2 = vld [vmem:[%s1086_s2 + $0x8] sm:$0xff] (!%p165_p9)   ;;  %p189_p10 = scmp.lt.s32.totalorder (!%p165_p9), %s931_s19, 1  ;;  %vm883_vm0 = vmmov (!%p165_p9), 0   ;;  %v809_v3 = vld [vmem:[%s1086_s2 + $0x10] sm:$0xff] (!%p165_p9)  }
   0xe   : > { %168 = sbr.rel (%p165_p9) target bundleno = 567 (0x237), region = 36  ;;  %695 = vmatprep.subr.bf16.mxu0 (!%p165_p9), %v882_v1  ;;  %675 = vmatprep.subr.bf16.mxu1 (!%p165_p9), %v882_v1  ;;  %v810_v4 = vld [vmem:[%s1086_s2 + $0x18] sm:$0xff] (!%p165_p9)   ;;  %v811_v5 = vld [vmem:[%s1086_s2 + $0x20] sm:$0xff] (!%p165_p9)   ;;  %v812_v8 = vld [vmem:[%s1086_s2 + $0x28] sm:$0xff] (!%p165_p9)   ;;  %vm406_vm1 = vcmask (!%p165_p9), 130048   ;;  %s186_s7 = sand.u32 (!%p165_p9), 1, %s872_s16  }
   0xf   : > { %696 = vmatpush3.bf16.msra.mxu0 (!%p165_p9), %v807_v0  ;;  %676 = vmatpush3.bf16.msra.mxu1 (!%p165_p9), %v807_v0  ;;  %v813_v10 = vld [vmem:[%s1086_s2 + $0x30] sm:$0xff] (!%p165_p9)   ;;  %v814_v12 = vld [vmem:[%s1086_s2 + $0x38] sm:$0xff] (!%p165_p9)   ;;  %v815_v18 = vld [vmem:[%s1087_s3] sm:$0xff] (!%p165_p9)   ;;  %s639_s11 = sshll.u32 (!%p165_p9), %s931_s19, 7  ;;  %s884_s27 = smov (!%p165_p9), [#allocation2]  }
  0x10   : > { %697 = vmatprep.subr.bf16.mxu0 (!%p165_p9), %v882_v1  ;;  %711 = vmatprep.mubr.msk.bf16.mxu0 (!%p165_p9), %vm883_vm0, %v882_v1  ;;  %v637_v37 = vld [vmem:[%s1085_s1] ss:$0 sm:$0xff] (!%p165_p9)  ;;  %s1042_s22 = scalar_lea.hbm (!%p165_p9), %s1088_s4, %s639_s11  ;;  %s822_s28 = sshll.u32 (!%p165_p9), %s884_s27, 4  ;;  %s823_s28 = int_to_ptr.vmem [resolvable:$false] %s822_s28 }
  0x11   : > { %677 = vmatprep.subr.bf16.mxu1 (!%p165_p9), %v882_v1  ;;  %691 = vmatprep.mubr.msk.bf16.mxu1 (!%p165_p9), %vm883_vm0, %v882_v1  ;;  %s824_s29 = scalar_lea.vmem (!%p165_p9), %s823_s28, 256 }
  0x13   : > { %698 = vmatpush3.bf16.msra.mxu0 (!%p165_p9), %v808_v2  ;;  %678 = vmatpush3.bf16.msra.mxu1 (!%p165_p9), %v808_v2 }
  0x14   : > { %699 = vmatprep.subr.bf16.mxu0 (!%p165_p9), %v882_v1  ;;  %679 = vmatprep.subr.bf16.mxu1 (!%p165_p9), %v882_v1 }
  0x15   : > { %s190_s5 = scalar_select %p189_p10, %s931_s19, 1 }
  0x16   : > { %s547_s19 = scalar_lea.sflag [#allocation3], %s186_s7 }
  0x17   : > { %s624_s8 = sshll.u32 %s190_s5, 3  ;;  %700 = vmatpush3.bf16.msra.mxu0 %v809_v3  ;;  %680 = vmatpush3.bf16.msra.mxu1 %v809_v3 }
  0x18   : > { %701 = vmatprep.subr.bf16.mxu0 %v882_v1  ;;  %s192_s13 = scalar_lea.vmem %s1084_s0, %s624_s8  ;;  %681 = vmatprep.subr.bf16.mxu1 %v882_v1  ;;  %s623_s8 = sshll.u32 %s186_s7, 3 }
  0x19   : > { %v990_v6 = vld [vmem:[%s192_s13] sm:$0xff]  ;;  %s188_s12 = scalar_lea.vmem [#allocation2], %s623_s8 }
  0x1a   : > { %v214_v7 = vmul.f32 %v990_v6, %v990_v6  ;;  %s560_s13 = sshll.u32 %s188_s12, 4  ;;  %s1044_s13 = int_to_ptr.vmem [resolvable:$true] %s560_s13 }
  0x1b   : > { %702 = vmatpush3.bf16.msra.mxu0 %v810_v4  ;;  %682 = vmatpush3.bf16.msra.mxu1 %v810_v4  ;;  %s818_s23 = scalar_lea.vmem %s1044_s13, 128  ;;  %p825_p0 = scmp.lt.s32.totalorder %s1044_s13, %s823_s28 }
  0x1c   : > { %703 = vmatprep.subr.bf16.mxu0 %v882_v1  ;;  %683 = vmatprep.subr.bf16.mxu1 %v882_v1  ;;  %v215_v9 = vpack.c.bf16 %v214_v7, %v214_v7  ;;  %p819_p11 = scmp.ne.s32.totalorder %s1044_s13, %s818_s23  ;;  %p826_p1 = scmp.lt.s32.totalorder %s824_s29, %s818_s23 }
  0x1e   : > { %v216_v11 = vunpack.c.l.bf16 %v215_v9  ;;  %p820_p12 = pnand %p819_p11, %p948_p5  ;;  %p827_p2 = por %p826_p1, %p825_p0 }
  0x1f   : > { %704 = vmatpush3.bf16.msra.mxu0 %v811_v5  ;;  %684 = vmatpush3.bf16.msra.mxu1 %v811_v5 }
  0x20   : > { %705 = vmatprep.subr.bf16.mxu0 %v882_v1  ;;  %685 = vmatprep.subr.bf16.mxu1 %v882_v1  ;;  %v217_v13 = vsub.f32 %v214_v7, %v216_v11  ;;  %p821_p13 = pneg %p820_p12 }
  0x22   : > { %v218_v14 = vpack.c.bf16 %v217_v13, %v217_v13  ;;  %p828_p3 = pnand %p827_p2, %p821_p13 }
  0x23   : > { %706 = vmatpush3.bf16.msra.mxu0 %v812_v8  ;;  %686 = vmatpush3.bf16.msra.mxu1 %v812_v8 }
  0x24   : > { %707 = vmatprep.subr.bf16.mxu0 %v882_v1  ;;  %687 = vmatprep.subr.bf16.mxu1 %v882_v1  ;;  %v347_v15 = vunpack.c.l.bf16 %v218_v14 }
  0x26   : > { %v348_v16 = vsub.f32 %v217_v13, %v347_v15 }
  0x27   : > { %708 = vmatpush3.bf16.msra.mxu0 %v813_v10  ;;  %688 = vmatpush3.bf16.msra.mxu1 %v813_v10 }
  0x28   : > { %709 = vmatprep.subr.bf16.mxu0 %v882_v1  ;;  %689 = vmatprep.subr.bf16.mxu1 %v882_v1  ;;  %v349_v17 = vpack.c.bf16 %v348_v16, %v348_v16 }
  0x2b   : > { %710 = vmatpush3.bf16.msra.mxu0 %v814_v12  ;;  %690 = vmatpush3.bf16.msra.mxu1 %v814_v12 }
  0x2c   : > { %715 = vmatprep.subr.bf16.mxu0 %v882_v1  ;;  %735 = vmatprep.subr.bf16.mxu1 %v882_v1 }
  0x2e   : > { %712 = vmatmul.mubr.bf16.vlgmr.msra.gmra.mrb[0].mxu0 %v215_v9  ;;  %692 = vmatmul.mubr.bf16.vlgmr.msra.gmra.mrb[0].mxu1 %v218_v14 }
  0x2f   : > { %716 = vmatpush3.bf16.msra.mxu0 %v807_v0  ;;  %731 = vmatprep.mubr.msk.bf16.mxu0 %vm883_vm0, %v882_v1 }
  0x30   : > { %717 = vmatprep.subr.bf16.mxu0 %v882_v1  ;;  %737 = vmatprep.mubr.msk.bf16.mxu1 %vm883_vm0, %v882_v1 }
  0x31   : > { %736 = vmatpush3.bf16.msra.mxu1 %v815_v18 }
  0x32   : > { %741 = vmatprep.subr.bf16.mxu1 %v882_v1 }
  0x33   : > { %718 = vmatpush3.bf16.msra.mxu0 %v808_v2 }
  0x34   : > { %719 = vmatprep.subr.bf16.mxu0 %v882_v1 }
  0x37   : > { %720 = vmatpush3.bf16.msra.mxu0 %v809_v3 }
  0x38   : > { %721 = vmatprep.subr.bf16.mxu0 %v882_v1 }
  0x3b   : > { %722 = vmatpush3.bf16.msra.mxu0 %v810_v4 }
  0x3c   : > { %723 = vmatprep.subr.bf16.mxu0 %v882_v1 }
  0x3f   : > { %724 = vmatpush3.bf16.msra.mxu0 %v811_v5 }
  0x40   : > { %725 = vmatprep.subr.bf16.mxu0 %v882_v1 }
  0x43   : > { %726 = vmatpush3.bf16.msra.mxu0 %v812_v8 }
  0x44   : > { %727 = vmatprep.subr.bf16.mxu0 %v882_v1 }
  0x47   : > { %728 = vmatpush3.bf16.msra.mxu0 %v813_v10 }
  0x48   : > { %729 = vmatprep.subr.bf16.mxu0 %v882_v1 }
  0x4b   : > { %730 = vmatpush3.bf16.msra.mxu0 %v814_v12 }
  0x4e   : > { %732 = vmatmul.mubr.bf16.vlgmr.msra.gmra.mrb[0].mxu0 %v349_v17 }
 0x101   : > { %v301_v19 = vpop.f32.mrb[0].mxu1 }
 0x102   : > { %v693_v20 = vpop.f32.mrb[1].mxu1 }
 0x103   : > { %v304_v21 = vpop.f32.mrb[2].mxu1 }
 0x104   : > { %v694_v22 = vpop.f32.mrb[3].mxu1 }
 0x121   : > { %v384_v23 = vpop.f32.mrb[0].mxu0 }
 0x122   : > { %v753_v24 = vadd.f32 %v384_v23, %v301_v19  ;;  %v733_v25 = vpop.f32.mrb[1].mxu0 }
 0x123   : > { %v387_v26 = vpop.f32.mrb[2].mxu0 }
 0x124   : > { %v391_v27 = vmax.f32 %v753_v24, 1e-24  ;;  %v734_v28 = vpop.f32.mrb[3].mxu0 }
 0x126   : > { %816 = vrsqrt.f32 %v391_v27 }
 0x130   : > { %v817_v29 = vpop.eup %816 }
 0x131   : > { %v393_v30 = vpack.c.bf16 %v817_v29, %v817_v29 }
 0x133   : > { %v394_v31 = vunpack.c.l.bf16 %v393_v30 }
 0x135   : > { %v395_v32 = vsub.f32 %v817_v29, %v394_v31 }
 0x137   : > { %v396_v33 = vpack.c.bf16 %v395_v32, %v395_v32 }
 0x139   : > { %738 = vmatmul.mubr.msk.bf16.vlgmr.msra.gmra.mrb[4].mxu1 %vm406_vm1, %v396_v33  ;;  %v397_v34 = vunpack.c.l.bf16 %v396_v33 }
 0x13a   : > { %742 = vmatpush3.bf16.msra.mxu1 %v815_v18  ;;  %743 = vmatprep.mubr.msk.bf16.mxu1 %vm883_vm0, %v882_v1 }
 0x13b   : > { %747 = vmatprep.subr.bf16.mxu1 %v882_v1  ;;  %v398_v35 = vsub.f32 %v395_v32, %v397_v34 }
 0x13d   : > { %v399_v36 = vpack.c.bf16 %v398_v35, %v398_v35 }
 0x145   : > { %744 = vmatmul.mubr.msk.bf16.vlgmr.msra.gmra.mrb[4].mxu1 %vm406_vm1, %v393_v30 }
 0x146   : > { %748 = vmatpush3.bf16.msra.mxu1 %v815_v18  ;;  %749 = vmatprep.mubr.msk.bf16.mxu1 %vm883_vm0, %v882_v1 }
 0x151   : > { %750 = vmatmul.mubr.msk.bf16.vlgmr.msra.gmra.mrb[4].mxu1 %vm406_vm1, %v399_v36 }
 0x224   : > { %v530_v38 = vpop.f32.mrb[4].mxu1 }
 0x225   : > { %v537_v39 = vmul.f32 %v530_v38, %v990_v6  ;;  %v751_v40 = vpop.f32.mrb[5].mxu1 }
 0x226   : > { %v533_v41 = vpop.f32.mrb[6].mxu1 }
 0x227   : > { %v544_v42 = vmul.f32 %v637_v37, %v537_v39  ;;  %v752_v43 = vpop.f32.mrb[7].mxu1 }
 0x229   : > { %545 = vst [vmem:[%s188_s12] sm:$0xff] %v544_v42 }
 0x22a   : > { %831 = shalt.err (!%p828_p3)
}
 0x22b   : > { %s832_s30 = scalar_lea.hbm %s1042_s22, 128  ;;  %s836_s7 = scalar_lea.hbm %s1088_s4, 256 }
 0x22c   : > { %p833_p4 = scmp.ne.s32.totalorder %s1042_s22, %s832_s30  ;;  %p837_p9 = scmp.lt.u32.totalorder %s1042_s22, %s1088_s4 }
 0x22d   : > { %p838_p10 = scmp.lt.u32.totalorder %s836_s7, %s832_s30  ;;  %p840_p12 = scmp.lt.u32.totalorder %s832_s30, %s1042_s22 }
 0x22e   : > { %p834_p7 = pnand %p833_p4, %p948_p5 }
 0x22f   : > { %p839_p11 = por %p838_p10, %p837_p9 }
 0x230   : > { %p835_p8 = pneg %p834_p7 }
 0x231   : > { %p841_p13 = por %p840_p12, %p839_p11 }
 0x233   : > { %p842_p0 = pnand %p841_p13, %p835_p8 }
 0x235   : > { %845 = shalt.err (!%p842_p0)
}
 0x236   : > { %766 = dma.vmem_to_hbm [thread:$0]  (%p948_p5), %s1044_s13, 128, %s1042_s22, %s547_s19  }
 0x237 PF: > { %p772_p1 = scmp.ge.s32.totalorder %s880_s18, 2  ;;  %s572_s10 = sand.u32 1, %s868_s15  }
 0x238   : > { %s573_s11 = scalar_lea.sflag [#allocation3], %s572_s10 }
 0x239   : > { %p769_p2 = pnand %p772_p1, %p952_p6 }
 0x23b   : > { %863 = dma.done.wait (!%p769_p2), %s573_s11, 128  }
 0x23c   : > { %865 = vsyncadd (!%p769_p2), %s573_s11, 4294967168  ;;  %p14_p3 = scmp.ge.s32.totalorder %s935_s21, 4   ;;  %s1091_s15 = smov %s872_s16 }
 0x23d   : > { %s1092_s16 = smov %s876_s17  ;;  %s1093_s17 = smov %s946_s24 }
 0x23e   : > { %s1094_s18 = smov %s935_s21  ;;  %16 = sbr.rel (!%p14_p3) target bundleno = 3 (0x3), region = 71 }
 0x245   :  { %578 = vsyncpa [#allocation3], 1 }
 0x246   :  { %580 = vsyncpa [#allocation3 + $0x1], 1 }

</bundles_post_ra>
